<compile_context>
chip_gen: v6e
topology: v6e:2x2x1
jax: 0.10.0
libtpu: 0.0.40
codegen_flags: <defaults>
</compile_context>

<pallas_src>
import functools

import jax
import jax.numpy as jnp
from jax.experimental import pallas as pl
from jax.experimental.pallas import tpu as pltpu


def _aux_weight_kernel(x_ref, w1t_ref, b1_ref, w2t_ref, b2_ref, o_ref, *, inv_s):
    # x_ref: (Nb, C, S) in the input's native dtype.
    x = x_ref[...]
    x_f32 = x.astype(jnp.float32)

    # Global average pool over the spatial (lane) dim -> (Nb, C), in f32.
    pooled = jnp.sum(x_f32, axis=-1) * inv_s

    # fc1 (1x1 conv) + ReLU: (Nb, C) @ (C, Cr) + (1, Cr) -> (Nb, Cr)
    h = jnp.dot(pooled, w1t_ref[...], preferred_element_type=jnp.float32)
    h = jnp.maximum(h + b1_ref[...], 0.0)

    # fc2 (1x1 conv) + sigmoid: (Nb, Cr) @ (Cr, C) + (1, C) -> (Nb, C)
    s = jnp.dot(h, w2t_ref[...], preferred_element_type=jnp.float32)
    s = jax.nn.sigmoid(s + b2_ref[...])

    # Scale input (f32 compute, cast back to the I/O dtype on store).
    o_ref[...] = (x_f32 * s[:, :, None]).astype(o_ref.dtype)


def _pick_batch_block(n, c, s, itemsize, max_tile_bytes=4 << 20):
    """Largest divisor of n whose (nb, C, S) tile fits the VMEM tile budget,
    while keeping >= 2 grid steps (when possible) so DMAs pipeline."""
    best = 1
    for nb in range(1, n + 1):
        if n % nb:
            continue
        if nb * c * s * itemsize > max_tile_bytes:
            continue
        if n >= 2 and (n // nb) < 2:
            continue
        best = nb
    return best


def aux_weight_layer(x_nchw, w1, b1, w2, b2):
    """x_nchw: (N, C, H, W); w1: (Cr, C); b1: (Cr,); w2: (C, Cr); b2: (C,)."""
    N, C, H, W = x_nchw.shape
    Cr = w1.shape[0]
    S = H * W

    # Keep the activation in its native dtype (bf16 stays bf16).
    x = x_nchw.reshape(N, C, S)
    io_dtype = x.dtype

    # Pre-transpose conv weights so the kernel does plain (N,K)@(K,M) matmuls.
    w1t = jnp.asarray(w1, jnp.float32).T          # (C, Cr)
    w2t = jnp.asarray(w2, jnp.float32).T          # (Cr, C)
    b1r = jnp.asarray(b1, jnp.float32).reshape(1, Cr)
    b2r = jnp.asarray(b2, jnp.float32).reshape(1, C)

    nb = _pick_batch_block(N, C, S, jnp.dtype(io_dtype).itemsize)
    grid = (N // nb,)

    kernel = functools.partial(_aux_weight_kernel, inv_s=1.0 / float(S))

    out = pl.pallas_call(
        kernel,
        out_shape=jax.ShapeDtypeStruct((N, C, S), io_dtype),
        grid=grid,
        in_specs=[
            pl.BlockSpec((nb, C, S), lambda i: (i, 0, 0)),
            pl.BlockSpec((C, Cr), lambda i: (0, 0)),
            pl.BlockSpec((1, Cr), lambda i: (0, 0)),
            pl.BlockSpec((Cr, C), lambda i: (0, 0)),
            pl.BlockSpec((1, C), lambda i: (0, 0)),
        ],
        out_specs=pl.BlockSpec((nb, C, S), lambda i: (i, 0, 0)),
        compiler_params=pltpu.CompilerParams(
            dimension_semantics=("parallel",)),
    )(x, w1t, b1r, w2t, b2r)

    return out.reshape(N, C, H, W)


if __name__ == "__main__":
    # Module config: in_channels=12, reduction=4 -> hidden channels = 3.
    in_channels = 12
    reduction = 4
    cr = in_channels // reduction

    N, H, W = 2, 16, 16

    key = jax.random.PRNGKey(0)
    kx, k1, k2, k3, k4 = jax.random.split(key, 5)

    x = jax.random.normal(kx, (N, in_channels, H, W), dtype=jnp.float32)

    # Deterministic "Conv2d(kernel_size=1)"-shaped parameters.
    w1 = 0.1 * jax.random.normal(k1, (cr, in_channels), dtype=jnp.float32)
    b1 = 0.1 * jax.random.normal(k2, (cr,), dtype=jnp.float32)
    w2 = 0.1 * jax.random.normal(k3, (in_channels, cr), dtype=jnp.float32)
    b2 = 0.1 * jax.random.normal(k4, (in_channels,), dtype=jnp.float32)

    out = aux_weight_layer(x, w1, b1, w2, b2)
    out = jax.block_until_ready(out)

    # Pure-JAX reference check of the same math.
    pooled = jnp.mean(x, axis=(2, 3))                       # (N, C)
    h = jnp.maximum(pooled @ w1.T + b1, 0.0)                # (N, Cr)
    s = jax.nn.sigmoid(h @ w2.T + b2)                       # (N, C)
    ref = x * s[:, :, None, None]
    assert out.shape == (N, in_channels, H, W)
    assert out.dtype == x.dtype
    assert jnp.allclose(out, ref, atol=1e-5, rtol=1e-5)

    print("KERNEL_OK")
</pallas_src>

<mosaic_0001>
module attributes {stable_mosaic.version = 11 : i64} {
  func.func @_aux_weight_kernel(%arg0: i32, %arg1: memref<1x12x256xf32, #tpu.memory_space<vmem>>, %arg2: memref<12x3xf32, #tpu.memory_space<vmem>>, %arg3: memref<1x3xf32, #tpu.memory_space<vmem>>, %arg4: memref<3x12xf32, #tpu.memory_space<vmem>>, %arg5: memref<1x12xf32, #tpu.memory_space<vmem>>, %arg6: memref<1x12x256xf32, #tpu.memory_space<vmem>>) attributes {dimension_semantics = [#tpu.dimension_semantics<parallel>], iteration_bounds = array<i64: 2>, scalar_prefetch = 0 : i64, scratch_operands = 0 : i64, tpu.core_type = #tpu.core_type<tc>, window_params = [{transform_indices = @transform_0, window_bounds = array<i64: 1, 12, 256>}, {pipeline_mode = #tpu.pipeline_mode<synchronous>, transform_indices = @transform_1, window_bounds = array<i64: 12, 3>}, {pipeline_mode = #tpu.pipeline_mode<synchronous>, transform_indices = @transform_2, window_bounds = array<i64: 1, 3>}, {pipeline_mode = #tpu.pipeline_mode<synchronous>, transform_indices = @transform_3, window_bounds = array<i64: 3, 12>}, {pipeline_mode = #tpu.pipeline_mode<synchronous>, transform_indices = @transform_4, window_bounds = array<i64: 1, 12>}, {transform_indices = @transform_5, window_bounds = array<i64: 1, 12, 256>}]} {
    %c0 = arith.constant 0 : index
    %c0_0 = arith.constant 0 : index
    %c0_1 = arith.constant 0 : index
    %0 = vector.load %arg1[%c0, %c0_0, %c0_1] : memref<1x12x256xf32, #tpu.memory_space<vmem>>, vector<1x12x256xf32>
    %cst = arith.constant dense<0.000000e+00> : vector<1x12xf32>
    %1 = vector.multi_reduction <add>, %0, %cst [2] : vector<1x12x256xf32> to vector<1x12xf32>
    %cst_2 = arith.constant 3.906250e-03 : f32
    %2 = vector.broadcast %cst_2 : f32 to vector<1x12xf32>
    %3 = arith.mulf %1, %2 : vector<1x12xf32>
    %c0_3 = arith.constant 0 : index
    %c0_4 = arith.constant 0 : index
    %4 = vector.load %arg2[%c0_3, %c0_4] : memref<12x3xf32, #tpu.memory_space<vmem>>, vector<12x3xf32>
    %cst_5 = arith.constant dense<0.000000e+00> : vector<1x3xf32>
    %5 = tpu.matmul %3, %4, %cst_5 {dimension_numbers = #tpu.dot_dimension_numbers<[1], [0], [0], [1], [0, 0, 1, 1], [], []>} : vector<1x12xf32>, vector<12x3xf32>, vector<1x3xf32> -> vector<1x3xf32>
    %c0_6 = arith.constant 0 : index
    %c0_7 = arith.constant 0 : index
    %6 = vector.load %arg3[%c0_6, %c0_7] : memref<1x3xf32, #tpu.memory_space<vmem>>, vector<1x3xf32>
    %7 = arith.addf %5, %6 : vector<1x3xf32>
    %cst_8 = arith.constant 0.000000e+00 : f32
    %8 = vector.broadcast %cst_8 : f32 to vector<1x3xf32>
    %9 = arith.maximumf %7, %8 : vector<1x3xf32>
    %c0_9 = arith.constant 0 : index
    %c0_10 = arith.constant 0 : index
    %10 = vector.load %arg4[%c0_9, %c0_10] : memref<3x12xf32, #tpu.memory_space<vmem>>, vector<3x12xf32>
    %cst_11 = arith.constant dense<0.000000e+00> : vector<1x12xf32>
    %11 = tpu.matmul %9, %10, %cst_11 {dimension_numbers = #tpu.dot_dimension_numbers<[1], [0], [0], [1], [0, 0, 1, 1], [], []>} : vector<1x3xf32>, vector<3x12xf32>, vector<1x12xf32> -> vector<1x12xf32>
    %c0_12 = arith.constant 0 : index
    %c0_13 = arith.constant 0 : index
    %12 = vector.load %arg5[%c0_12, %c0_13] : memref<1x12xf32, #tpu.memory_space<vmem>>, vector<1x12xf32>
    %13 = arith.addf %11, %12 : vector<1x12xf32>
    %14 = arith.negf %13 : vector<1x12xf32>
    %15 = math.exp %14 : vector<1x12xf32>
    %cst_14 = arith.constant 1.000000e+00 : f32
    %16 = vector.broadcast %cst_14 : f32 to vector<1x12xf32>
    %17 = arith.addf %16, %15 : vector<1x12xf32>
    %18 = arith.divf %16, %17 : vector<1x12xf32>
    %19 = vector.shape_cast %18 : vector<1x12xf32> to vector<1x12x1xf32>
    %20 = vector.broadcast %19 : vector<1x12x1xf32> to vector<1x12x256xf32>
    %21 = arith.mulf %0, %20 : vector<1x12x256xf32>
    %c0_15 = arith.constant 0 : index
    %c0_16 = arith.constant 0 : index
    %c0_17 = arith.constant 0 : index
    %22 = vector.load %arg6[%c0_15, %c0_16, %c0_17] : memref<1x12x256xf32, #tpu.memory_space<vmem>>, vector<1x12x256xf32>
    tpu.vector_store %arg6[%c0_15, %c0_16, %c0_17], %21 {strides = array<i32>} : memref<1x12x256xf32, #tpu.memory_space<vmem>>, vector<1x12x256xf32>,
    return
  }
  func.func @transform_0(%arg0: i32) -> (i32, i32, i32) {
    %c0_i32 = arith.constant 0 : i32
    %c0_i32_0 = arith.constant 0 : i32
    %c0_i32_1 = arith.constant 0 : i32
    return %arg0, %c0_i32, %c0_i32_0 : i32, i32, i32
  }
  func.func @transform_1(%arg0: i32) -> (i32, i32) {
    %c0_i32 = arith.constant 0 : i32
    %c0_i32_0 = arith.constant 0 : i32
    %c0_i32_1 = arith.constant 0 : i32
    return %c0_i32, %c0_i32_0 : i32, i32
  }
  func.func @transform_2(%arg0: i32) -> (i32, i32) {
    %c0_i32 = arith.constant 0 : i32
    %c0_i32_0 = arith.constant 0 : i32
    %c0_i32_1 = arith.constant 0 : i32
    return %c0_i32, %c0_i32_0 : i32, i32
  }
  func.func @transform_3(%arg0: i32) -> (i32, i32) {
    %c0_i32 = arith.constant 0 : i32
    %c0_i32_0 = arith.constant 0 : i32
    %c0_i32_1 = arith.constant 0 : i32
    return %c0_i32, %c0_i32_0 : i32, i32
  }
  func.func @transform_4(%arg0: i32) -> (i32, i32) {
    %c0_i32 = arith.constant 0 : i32
    %c0_i32_0 = arith.constant 0 : i32
    %c0_i32_1 = arith.constant 0 : i32
    return %c0_i32, %c0_i32_0 : i32, i32
  }
  func.func @transform_5(%arg0: i32) -> (i32, i32, i32) {
    %c0_i32 = arith.constant 0 : i32
    %c0_i32_0 = arith.constant 0 : i32
    %c0_i32_1 = arith.constant 0 : i32
    return %arg0, %c0_i32, %c0_i32_0 : i32, i32, i32
  }
}

</mosaic_0001>

<bundles_post_ra>
// kernel: tpu_custom_call.1
= control target key start
LH: loop header
LB: loop body
LE: loop exit
PB: predicated region body
PF: predicated region fallthrough
CT: control target
= control target key end

     0   :  { %s584_s18 = smov 0   ;;  %s642_s0 = inlined_call_operand.vmem [shape: f32[2,12,256], index: 0, kind: input, shape index: {}]   ;;  %s643_s1 = inlined_call_operand.vmem [shape: f32[12,3], index: 1, kind: input, shape index: {}]   ;;  %s644_s2 = inlined_call_operand.vmem [shape: f32[1,3], index: 2, kind: input, shape index: {}]   ;;  %s645_s3 = inlined_call_operand.vmem [shape: f32[3,12], index: 3, kind: input, shape index: {}]   ;;  %s646_s4 = inlined_call_operand.vmem [shape: f32[1,12], index: 4, kind: input, shape index: {}]   ;;  %s647_s5 = inlined_call_operand.vmem [shape: f32[2,12,256], index: 5, kind: output, shape index: {}]  }
   0x1 LB: > { %s495_s19 = sadd.s32 4294967295, %s550_s18   ;;  %p499_p0 = scmp.ge.s32.totalorder %s550_s18, 1  ;;  %s550_s18 = sphi %s584_s18, %s15_s18  }
   0x2   : > { %p187_p1 = scmp.lt.s32.totalorder %s550_s18, 3 }
   0x4   : > { %p188_p2 = pnand %p499_p0, %p187_p1 }
   0x5   : > { %p215_p3 = scmp.lt.s32.totalorder (!%p188_p2), %s495_s19, 1 }
   0x6   : > { %191 = sbr.rel (%p188_p2) target bundleno = 712 (0x2c8), region = 40 }
   0xb   : > { %s649_s19 = smov (!%p215_p3, %s495_s19), 1  ;;  %vm232_vm0 = vcmask 1043456   ;;  %v552_v8 = vmov 0.0   ;;  %v241_v9 = vld [vmem:[%s643_s1 + $0x8] sm:$0xf]  ;;  %v240_v10 = vld [vmem:[%s643_s1] sm:$0xff]  ;;  %v245_v11 = vlaneseq }
   0xc   : > { %s511_s20 = sshll.u32 %s649_s19, 5  ;;  %518 = vmatprep.subr.mxu0 %v552_v8  ;;  %525 = vmatprep.subr.mxu1 %v552_v8  ;;  %vm553_vm1 = vmmov 0   ;;  %vm256_vm2 = vcmask 130112   ;;  %vm258_vm3 = vcmask 97280   ;;  %v335_v24 = vld [vmem:[%s645_s3] sm:$0x7] }
   0xd   : > { %s219_s23 = scalar_lea.vmem %s642_s0, %s511_s20  ;;  %519 = vmatpush3.msk.msra.mxu0 %vm232_vm0, %v241_v9  ;;  %522 = vmatprep.mubr.msk.f32.mxu0 %vm553_vm1, %v552_v8  ;;  %v246_v12 = vand.u32 127, %v245_v11  ;;  %v248_v13 = vshrl.u32 %v245_v11, 7  ;;  %vm341_vm4 = vcmask 1042432   ;;  %v242_v25 = vld [vmem:[%s644_s2] sm:$0x1]  ;;  %vm337_vm5 = vcmask 23552   ;;  %s224_s11 = scalar_lea.vmem %s647_s5, %s511_s20 }
   0xe   : > { %v600_v0 = vld [vmem:[%s219_s23] sm:$0xff]  ;;  %v602_v1 = vld [vmem:[%s219_s23 + $0x8] sm:$0xff]  ;;  %v604_v2 = vld [vmem:[%s219_s23 + $0x10] sm:$0xf]  ;;  %520 = vmatprep.subr.mxu0 %v552_v8  ;;  %527 = vmatprep.mubr.msk.f32.mxu1 %vm553_vm1, %v552_v8 }
   0xf   : > { %v229_v3 = vadd.f32 %v602_v1, %v600_v0  ;;  %v608_v4 = vld [vmem:[%s219_s23 + $0x18] sm:$0xf]  ;;  %v233_v5 = vsel %vm232_vm0, %v604_v2, 0.0  ;;  %521 = vmatpush3.msra.mxu0 %v240_v10  ;;  %v251_v14 = vadd.s32 4294967288, %v246_v12  ;;  %v249_v16 = vsub.s32 %v246_v12, %v248_v13  ;;  %526 = vmatpush3.msk.msra.mxu1 %vm341_vm4, %v335_v24  ;;  %v336_v30 = vld [vmem:[%s646_s4] sm:$0x1] }
  0x10   : > { %v234_v6 = vsel %vm232_vm0, %v608_v4, 0.0  ;;  %v423_v37 = vsub.s32 0, %v248_v13 }
  0x11   : > { %230 = vadd.xlane.f32.xlu0 %v229_v3  ;;  %v235_v7 = vadd.f32 %v234_v6, %v233_v5  ;;  %v254_v18 = vsub.s32 %v251_v14, %v248_v13 }
  0x15   : > { %236 = vadd.xlane.f32.xlu0 %v235_v7 }
  0x9a   : > { %v231_v15 = vpop.xlane.xlu0 %230 }
  0x9b   : > { %v238_v17 = vmul.f32 0.00390625, %v231_v15 }
  0x9d   : > { %v250_v21 = vrot.slane %v238_v17, %v249_v16 }
  0x9e   : > { %v237_v19 = vpop.xlane.xlu0 %236 }
  0x9f   : > { %v239_v20 = vmul.f32 0.00390625, %v237_v19 }
  0xa1   : > { %v255_v22 = vrot.slane %v239_v20, %v254_v18 }
  0xa3   : > { %v257_v23 = vsel %vm256_vm2, %v255_v22, %v250_v21 }
  0xa4   : > { %523 = vmatmul.mubr.msk.f32.vlgmr.msra.gmra.mxu0 %vm258_vm3, %v257_v23 }
 0x164   : > { %v330_v26 = vpop.f32.mrf.mxu0 }
 0x165   : > { %v331_v27 = vadd.f32 %v330_v26, %v242_v25 }
 0x166   : > { %v524_v28 = vpop.f32.mrf.mxu0 }
 0x167   : > { %v334_v29 = vmax.f32 %v331_v27, 0.0 }
 0x169   : > { %528 = vmatmul.mubr.msk.f32.vlgmr.msra.gmra.mxu1 %vm337_vm5, %v334_v29 }
 0x229   : > { %v411_v31 = vpop.f32.mrf.mxu1 }
 0x22a   : > { %v412_v32 = vadd.f32 %v411_v31, %v336_v30 }
 0x22b   : > { %v529_v33 = vpop.f32.mrf.mxu1 }
 0x22c   : > { %v508_v34 = vmul.f32 -1.442695, %v412_v32 }
 0x22e   : > { %540 = vpow2.f32 %v508_v34 }
 0x23b   : > { %v541_v35 = vpop.eup %540 }
 0x23c   : > { %v418_v36 = vadd.f32 1.0, %v541_v35 }
 0x23e   : > { %542 = vrcp.f32 %v418_v36 }
 0x24b   : > { %v543_v38 = vpop.eup %542 }
 0x24c   : > { %v424_v39 = vrot.slane %v543_v38, %v423_v37 }
 0x24e   : > { %426 = vbcast.lane.b32.xlu1 %v424_v39, 256 }
 0x252   : > { %430 = vbcast.lane.b32.xlu1 %v424_v39, 264 }
 0x2c0   : > { %v427_v40 = vpop.permute.xlu1 %426 }
 0x2c1   : > { %v432_v41 = vmul.f32 %v427_v40, %v600_v0  ;;  %v433_v42 = vmul.f32 %v427_v40, %v602_v1 }
 0x2c3   : > { %436 = vst [vmem:[%s224_s11] sm:$0xff] %v432_v41  ;;  %437 = vst [vmem:[%s224_s11 + $0x8] sm:$0xff] %v433_v42 }
 0x2c4   : > { %v431_v43 = vpop.permute.xlu1 %430 }
 0x2c5   : > { %v434_v44 = vmul.f32 %v431_v43, %v604_v2  ;;  %v435_v45 = vmul.f32 %v431_v43, %v608_v4 }
 0x2c7   : > { %438 = vst [vmem:[%s224_s11 + $0x10] sm:$0xf] %v434_v44  ;;  %439 = vst [vmem:[%s224_s11 + $0x18] sm:$0xf] %v435_v45 }
 0x2c8 PF: > { %s15_s18 = sadd.s32 1, %s550_s18  }
 0x2c9   : > { %p12_p4 = scmp.ge.s32.totalorder %s15_s18, 4  }
 0x2cb   :  { %14 = sbr.rel (!%p12_p4) target bundleno = 1 (0x1), region = 70 }

</bundles_post_ra>
